<compile_context>
chip_gen: v5e
topology: v5e:2x2
jax: 0.10.0
libtpu: 0.0.40
codegen_flags: <defaults>
</compile_context>

<pallas_src>
import functools

import jax
import jax.numpy as jnp
from jax.experimental import pallas as pl
from jax.experimental.pallas import tpu as pltpu

IN_DIM, H1_DIM, H2_DIM, OUT_DIM = 19, 19, 10, 4

IN_PAD = 24    # 19 -> 24  (3 sublane groups)
H_PAD = 24     # hidden dims 19/10 -> 24 sublanes
OUT_PAD = 8    # 4 -> 8    (1 sublane group)


def _round_up(n, m):
    return ((n + m - 1) // m) * m


def _choose_batch_tile(b_pad):
    """Largest lane-aligned tile dividing b_pad that still leaves >=2 grid
    steps (v7x dual-TC); falls back to a single 128 block for tiny batches."""
    for t in (4096, 2048, 1024, 512, 256, 128):
        if b_pad % t == 0 and b_pad // t >= 2:
            return t
    return 128


def _sigmoid(z):
    # exp and the approximate reciprocal both run on the EUP slot (frees VALU).
    return pl.reciprocal(1.0 + jnp.exp(-z), approx=True)


def mlp_kernel(x_ref, w_ref, b_ref, o_ref):
    # x_ref: (IN_PAD, TB)   w_ref: (3, H_PAD, H_PAD)   b_ref: (3, H_PAD, 1)
    # o_ref: (OUT_PAD, TB)  -- batch lives in the lane (minor) dim throughout.
    x = x_ref[...]
    h1 = _sigmoid(
        jnp.dot(w_ref[0], x, preferred_element_type=jnp.float32) + b_ref[0])
    h2 = _sigmoid(
        jnp.dot(w_ref[1], h1, preferred_element_type=jnp.float32) + b_ref[1])
    z3 = (jnp.dot(w_ref[2, :OUT_PAD, :], h2, preferred_element_type=jnp.float32)
          + b_ref[2, :OUT_PAD, :])
    o_ref[...] = _sigmoid(z3).astype(o_ref.dtype)


def pack_params(w1, b1, w2, b2, w3, b3):
    """Zero-pad all layer params once into two tiny, VMEM-resident slabs.

    Weights are kept in PyTorch's (out_features, in_features) orientation; the
    kernel computes y^T = W @ x^T + b, which equals nn.Linear's x @ W^T + b.
    Invariant: weight columns corresponding to padded hidden rows are zero.
    """
    w_slab = jnp.zeros((3, H_PAD, H_PAD), jnp.float32)
    w_slab = w_slab.at[0, : w1.shape[0], : w1.shape[1]].set(w1.astype(jnp.float32))
    w_slab = w_slab.at[1, : w2.shape[0], : w2.shape[1]].set(w2.astype(jnp.float32))
    w_slab = w_slab.at[2, : w3.shape[0], : w3.shape[1]].set(w3.astype(jnp.float32))

    b_slab = jnp.zeros((3, H_PAD, 1), jnp.float32)
    b_slab = b_slab.at[0, : b1.shape[-1], 0].set(b1.reshape(-1).astype(jnp.float32))
    b_slab = b_slab.at[1, : b2.shape[-1], 0].set(b2.reshape(-1).astype(jnp.float32))
    b_slab = b_slab.at[2, : b3.shape[-1], 0].set(b3.reshape(-1).astype(jnp.float32))
    return w_slab, b_slab


@functools.partial(jax.jit, static_argnames=("in_dim", "out_dim"))
def mlp_forward(x, w_slab, b_slab, *, in_dim=IN_DIM, out_dim=OUT_DIM):
    """y = sigmoid(fc3(sigmoid(fc2(sigmoid(fc1(x)))))) via one Pallas call."""
    B = x.shape[0]
    B_pad = _round_up(max(B, 1), 128)        # batch is the lane dim -> 128-aligned
    TB = _choose_batch_tile(B_pad)
    grid = (B_pad // TB,)

    # Transposed "batch-in-lane" layout; under jit this pad+transpose fuses
    # into a single small copy (24 feature rows instead of a 128-wide slab).
    x_t = jnp.zeros((IN_PAD, B_pad), jnp.float32)
    x_t = x_t.at[:in_dim, :B].set(x.astype(jnp.float32).T)

    flops = 2 * B_pad * (H_PAD * H_PAD + H_PAD * H_PAD + OUT_PAD * H_PAD)
    transcendentals = 2 * B_pad * (H_PAD + H_PAD + OUT_PAD)   # exp + recip
    bytes_accessed = 4 * (IN_PAD * B_pad + OUT_PAD * B_pad
                          + 3 * H_PAD * H_PAD + 3 * H_PAD)

    out_t = pl.pallas_call(
        mlp_kernel,
        out_shape=jax.ShapeDtypeStruct((OUT_PAD, B_pad), jnp.float32),
        grid=grid,
        in_specs=[
            # x: tiled over the batch (lane) grid axis, only 24 feature rows.
            pl.BlockSpec((IN_PAD, TB), lambda i: (0, i)),
            # weights / biases: constant block index -> fetched once, resident.
            pl.BlockSpec((3, H_PAD, H_PAD), lambda i: (0, 0, 0)),
            pl.BlockSpec((3, H_PAD, 1), lambda i: (0, 0, 0)),
        ],
        # lane-dense (TB multiple of 128) unmasked stores, only 8 rows wide.
        out_specs=pl.BlockSpec((OUT_PAD, TB), lambda i: (0, i)),
        compiler_params=pltpu.CompilerParams(
            dimension_semantics=("parallel",)),
        cost_estimate=pl.CostEstimate(
            flops=flops,
            transcendentals=transcendentals,
            bytes_accessed=bytes_accessed),
    )(x_t, w_slab, b_slab)

    # (out_dim, B) -> (B, out_dim); fuses with the slice under jit.
    return out_t[:out_dim, :B].T


def init_linear_params(key, in_features, out_features):
    """Deterministic init mimicking nn.Linear's uniform(-1/sqrt(in), 1/sqrt(in)).

    Stored in PyTorch orientation: W is (out_features, in_features).
    """
    kw, kb = jax.random.split(key)
    bound = 1.0 / jnp.sqrt(jnp.float32(in_features))
    w = jax.random.uniform(kw, (out_features, in_features), jnp.float32, -bound, bound)
    b = jax.random.uniform(kb, (out_features,), jnp.float32, -bound, bound)
    return w, b


if __name__ == "__main__":
    key = jax.random.PRNGKey(0)
    k_x, k1, k2, k3 = jax.random.split(key, 4)

    B = 8
    x = jax.random.normal(k_x, (B, IN_DIM), dtype=jnp.float32)

    w1, b1 = init_linear_params(k1, IN_DIM, H1_DIM)
    w2, b2 = init_linear_params(k2, H1_DIM, H2_DIM)
    w3, b3 = init_linear_params(k3, H2_DIM, OUT_DIM)

    # Pack / pad parameters ONCE (not per forward call).
    w_slab, b_slab = pack_params(w1, b1, w2, b2, w3, b3)

    out = mlp_forward(x, w_slab, b_slab, in_dim=IN_DIM, out_dim=OUT_DIM)
    out = jax.block_until_ready(out)

    # Reference check in plain JAX (same math as the PyTorch module).
    ref = jax.nn.sigmoid(x @ w1.T + b1[None, :])
    ref = jax.nn.sigmoid(ref @ w2.T + b2[None, :])
    ref = jax.nn.sigmoid(ref @ w3.T + b3[None, :])

    assert out.shape == (B, OUT_DIM)
    # Tolerance relaxed vs. 1e-5 because the kernel uses the EUP approximate
    # reciprocal for sigmoid (abs error ~1e-4).
    assert jnp.allclose(out, ref, atol=2e-3, rtol=2e-3)

    print("KERNEL_OK")
</pallas_src>

<mosaic_0001>
module attributes {stable_mosaic.version = 11 : i64} {
  func.func @mlp_kernel(%arg0: i32, %arg1: memref<24x128xf32, #tpu.memory_space<vmem>>, %arg2: memref<3x24x24xf32, #tpu.memory_space<vmem>>, %arg3: memref<3x24x1xf32, #tpu.memory_space<vmem>>, %arg4: memref<8x128xf32, #tpu.memory_space<vmem>>) attributes {dimension_semantics = [#tpu.dimension_semantics<parallel>], iteration_bounds = array<i64: 1>, scalar_prefetch = 0 : i64, scratch_operands = 0 : i64, tpu.core_type = #tpu.core_type<tc>, window_params = [{transform_indices = @transform_0, window_bounds = array<i64: 24, 128>}, {pipeline_mode = #tpu.pipeline_mode<synchronous>, transform_indices = @transform_1, window_bounds = array<i64: 3, 24, 24>}, {pipeline_mode = #tpu.pipeline_mode<synchronous>, transform_indices = @transform_2, window_bounds = array<i64: 3, 24, 1>}, {transform_indices = @transform_3, window_bounds = array<i64: 8, 128>}]} {
    %c0 = arith.constant 0 : index
    %c0_0 = arith.constant 0 : index
    %0 = vector.load %arg1[%c0, %c0_0] : memref<24x128xf32, #tpu.memory_space<vmem>>, vector<24x128xf32>
    %c0_1 = arith.constant 0 : index
    %c0_2 = arith.constant 0 : index
    %c0_3 = arith.constant 0 : index
    %1 = vector.load %arg2[%c0_1, %c0_2, %c0_3] : memref<3x24x24xf32, #tpu.memory_space<vmem>>, vector<1x24x24xf32>
    %2 = vector.shape_cast %1 : vector<1x24x24xf32> to vector<24x24xf32>
    %cst = arith.constant dense<0.000000e+00> : vector<24x128xf32>
    %3 = tpu.matmul %2, %0, %cst {dimension_numbers = #tpu.dot_dimension_numbers<[1], [0], [0], [1], [0, 0, 1, 1], [], []>} : vector<24x24xf32>, vector<24x128xf32>, vector<24x128xf32> -> vector<24x128xf32>
    %c0_4 = arith.constant 0 : index
    %c0_5 = arith.constant 0 : index
    %c0_6 = arith.constant 0 : index
    %4 = vector.load %arg3[%c0_4, %c0_5, %c0_6] : memref<3x24x1xf32, #tpu.memory_space<vmem>>, vector<1x24x1xf32>
    %5 = vector.shape_cast %4 : vector<1x24x1xf32> to vector<24x1xf32>
    %6 = vector.broadcast %5 : vector<24x1xf32> to vector<24x128xf32>
    %7 = arith.addf %3, %6 : vector<24x128xf32>
    %cst_7 = arith.constant 0.000000e+00 : f32
    %8 = vector.broadcast %cst_7 : f32 to vector<24x128xf32>
    %9 = arith.subf %8, %7 : vector<24x128xf32>
    %10 = math.exp %9 : vector<24x128xf32>
    %cst_8 = arith.constant 1.000000e+00 : f32
    %11 = vector.broadcast %cst_8 : f32 to vector<24x128xf32>
    %12 = arith.addf %11, %10 : vector<24x128xf32>
    %13 = tpu.reciprocal %12 {approx = true} : vector<24x128xf32> -> vector<24x128xf32>
    %c1 = arith.constant 1 : index
    %c0_9 = arith.constant 0 : index
    %c0_10 = arith.constant 0 : index
    %14 = vector.load %arg2[%c1, %c0_9, %c0_10] : memref<3x24x24xf32, #tpu.memory_space<vmem>>, vector<1x24x24xf32>
    %15 = vector.shape_cast %14 : vector<1x24x24xf32> to vector<24x24xf32>
    %cst_11 = arith.constant dense<0.000000e+00> : vector<24x128xf32>
    %16 = tpu.matmul %15, %13, %cst_11 {dimension_numbers = #tpu.dot_dimension_numbers<[1], [0], [0], [1], [0, 0, 1, 1], [], []>} : vector<24x24xf32>, vector<24x128xf32>, vector<24x128xf32> -> vector<24x128xf32>
    %c1_12 = arith.constant 1 : index
    %c0_13 = arith.constant 0 : index
    %c0_14 = arith.constant 0 : index
    %17 = vector.load %arg3[%c1_12, %c0_13, %c0_14] : memref<3x24x1xf32, #tpu.memory_space<vmem>>, vector<1x24x1xf32>
    %18 = vector.shape_cast %17 : vector<1x24x1xf32> to vector<24x1xf32>
    %19 = vector.broadcast %18 : vector<24x1xf32> to vector<24x128xf32>
    %20 = arith.addf %16, %19 : vector<24x128xf32>
    %cst_15 = arith.constant 0.000000e+00 : f32
    %21 = vector.broadcast %cst_15 : f32 to vector<24x128xf32>
    %22 = arith.subf %21, %20 : vector<24x128xf32>
    %23 = math.exp %22 : vector<24x128xf32>
    %cst_16 = arith.constant 1.000000e+00 : f32
    %24 = vector.broadcast %cst_16 : f32 to vector<24x128xf32>
    %25 = arith.addf %24, %23 : vector<24x128xf32>
    %26 = tpu.reciprocal %25 {approx = true} : vector<24x128xf32> -> vector<24x128xf32>
    %c2 = arith.constant 2 : index
    %c0_17 = arith.constant 0 : index
    %c0_18 = arith.constant 0 : index
    %27 = vector.load %arg2[%c2, %c0_17, %c0_18] : memref<3x24x24xf32, #tpu.memory_space<vmem>>, vector<1x8x24xf32>
    %28 = vector.shape_cast %27 : vector<1x8x24xf32> to vector<8x24xf32>
    %cst_19 = arith.constant dense<0.000000e+00> : vector<8x128xf32>
    %29 = tpu.matmul %28, %26, %cst_19 {dimension_numbers = #tpu.dot_dimension_numbers<[1], [0], [0], [1], [0, 0, 1, 1], [], []>} : vector<8x24xf32>, vector<24x128xf32>, vector<8x128xf32> -> vector<8x128xf32>
    %c2_20 = arith.constant 2 : index
    %c0_21 = arith.constant 0 : index
    %c0_22 = arith.constant 0 : index
    %30 = vector.load %arg3[%c2_20, %c0_21, %c0_22] : memref<3x24x1xf32, #tpu.memory_space<vmem>>, vector<1x8x1xf32>
    %31 = vector.shape_cast %30 : vector<1x8x1xf32> to vector<8x1xf32>
    %32 = vector.broadcast %31 : vector<8x1xf32> to vector<8x128xf32>
    %33 = arith.addf %29, %32 : vector<8x128xf32>
    %cst_23 = arith.constant 0.000000e+00 : f32
    %34 = vector.broadcast %cst_23 : f32 to vector<8x128xf32>
    %35 = arith.subf %34, %33 : vector<8x128xf32>
    %36 = math.exp %35 : vector<8x128xf32>
    %cst_24 = arith.constant 1.000000e+00 : f32
    %37 = vector.broadcast %cst_24 : f32 to vector<8x128xf32>
    %38 = arith.addf %37, %36 : vector<8x128xf32>
    %39 = tpu.reciprocal %38 {approx = true} : vector<8x128xf32> -> vector<8x128xf32>
    %c0_25 = arith.constant 0 : index
    %c0_26 = arith.constant 0 : index
    %40 = vector.load %arg4[%c0_25, %c0_26] : memref<8x128xf32, #tpu.memory_space<vmem>>, vector<8x128xf32>
    tpu.vector_store %arg4[%c0_25, %c0_26], %39 {strides = array<i32>} : memref<8x128xf32, #tpu.memory_space<vmem>>, vector<8x128xf32>,
    return
  }
  func.func @transform_0(%arg0: i32) -> (i32, i32) {
    %c0_i32 = arith.constant 0 : i32
    %c0_i32_0 = arith.constant 0 : i32
    return %c0_i32, %arg0 : i32, i32
  }
  func.func @transform_1(%arg0: i32) -> (i32, i32, i32) {
    %c0_i32 = arith.constant 0 : i32
    %c0_i32_0 = arith.constant 0 : i32
    %c0_i32_1 = arith.constant 0 : i32
    %c0_i32_2 = arith.constant 0 : i32
    return %c0_i32, %c0_i32_0, %c0_i32_1 : i32, i32, i32
  }
  func.func @transform_2(%arg0: i32) -> (i32, i32, i32) {
    %c0_i32 = arith.constant 0 : i32
    %c0_i32_0 = arith.constant 0 : i32
    %c0_i32_1 = arith.constant 0 : i32
    %c0_i32_2 = arith.constant 0 : i32
    return %c0_i32, %c0_i32_0, %c0_i32_1 : i32, i32, i32
  }
  func.func @transform_3(%arg0: i32) -> (i32, i32) {
    %c0_i32 = arith.constant 0 : i32
    %c0_i32_0 = arith.constant 0 : i32
    return %c0_i32, %arg0 : i32, i32
  }
}

</mosaic_0001>

<bundles_post_ra>
// kernel: mlp_forward.1
= control target key start
LH: loop header
LB: loop body
LE: loop exit
PB: predicated region body
PF: predicated region fallthrough
CT: control target
= control target key end

     0   :  { %v257_v2 = vmov 0   ;;  %vm38_vm0 = vcmask 195584   ;;  %s339_s0 = inlined_call_operand.vmem [shape: f32[24,128], index: 0, kind: input, shape index: {}]   ;;  %s340_s2 = inlined_call_operand.vmem [shape: f32[3,24,1], index: 2, kind: input, shape index: {}]   ;;  %s341_s1 = inlined_call_operand.vmem [shape: f32[3,24,24], index: 1, kind: input, shape index: {}]   ;;  %s342_s3 = inlined_call_operand.vmem [shape: f32[8,128], index: 3, kind: output, shape index: {}]  }
   0x1   :  { %v16_v0 = vld [vmem:[%s339_s0 + $0x10] sm:$0xff]  ;;  %v15_v1 = vld [vmem:[%s339_s0 + $0x8] sm:$0xff]  ;;  %226 = vset.pattern.permute.xlu0 %v257_v2  ;;  %227 = vset.pattern.permute.xlu1 %v257_v2  ;;  %v14_v4 = vld [vmem:[%s339_s0] sm:$0xff] }
   0x2   :  { %219 = vmatpush.msra.mxu3 %v16_v0  ;;  %v22_v3 = vld [vmem:[%s340_s2 + $0x10] sm:$0xff]  ;;  %61 = vmatpush.msra.mxu0 %v16_v0  ;;  %v18_v5 = vld [vmem:[%s341_s1 + $0x8] sm:$0xff]  ;;  %v17_v6 = vld [vmem:[%s341_s1] sm:$0xff] }
   0x3   :  { %35 = vperm.xlu0 %226, %v22_v3   ;;  %228 = vset.pattern.permute.xlu2 %v257_v2  ;;  %v20_v7 = vld [vmem:[%s340_s2] sm:$0xff]  ;;  %v21_v8 = vld [vmem:[%s340_s2 + $0x8] sm:$0xff]  ;;  %v19_v10 = vld [vmem:[%s341_s1 + $0x10] sm:$0xff] }
   0x4   :  { %220 = vmatpush.msra.mxu3 %v15_v1  ;;  %62 = vmatpush.msra.mxu0 %v15_v1  ;;  %v212_v9 = vld [vmem:[%s340_s2 + $0x28] sm:$0xff]  ;;  %v217_v11 = vld [vmem:[%s340_s2 + $0x30] sm:$0xff]  ;;  %v211_v26 = vld [vmem:[%s340_s2 + $0x20] sm:$0xff] }
   0x5   :  { %25 = vperm.xlu1 %227, %v20_v7   ;;  %104 = vperm.xlu2 %228, %v211_v26   ;;  %v210_v29 = vld [vmem:[%s340_s2 + $0x18] sm:$0xff]  ;;  %v208_v38 = vld [vmem:[%s341_s1 + $0x20] sm:$0xff]  ;;  %v209_v40 = vld [vmem:[%s341_s1 + $0x28] sm:$0xff] }
   0x6   :  { %221 = vmatpush.msra.mxu3 %v14_v4  ;;  %63 = vmatpush.msra.mxu0 %v14_v4  ;;  %v207_v39 = vld [vmem:[%s341_s1 + $0x18] sm:$0xff]  ;;  %v216_v0 = vld [vmem:[%s341_s1 + $0x30] sm:$0xff] }
   0x7   :  { %205 = vmatmul.msk.f32.vlgmr.msra.gmra.mxu3 %vm38_vm0, %v18_v5  ;;  %204 = vmatmul.msk.f32.vlgmr.msra.gmra.mxu0 %vm38_vm0, %v17_v6 }
   0xb   :  { %30 = vperm.xlu0 %226, %v21_v8  }
   0xd   :  { %109 = vperm.xlu1 %227, %v212_v9   ;;  %99 = vperm.xlu2 %228, %v210_v29  }
   0xf   :  { %206 = vmatmul.msk.f32.gmra.mxu3 %vm38_vm0, %v19_v10 }
  0x13   :  { %168 = vperm.xlu0 %226, %v217_v11  }
  0x5f   :  { %v105_v41 = vpop.permute.xlu2 %104 }
  0x67   :  { %v100_v42 = vpop.permute.xlu2 %99 }
  0x75   :  { %v36_v12 = vpop.permute.xlu0 %35 }
  0x77   :  { %v26_v14 = vpop.permute.xlu1 %25 }
  0x7d   :  { %v31_v15 = vpop.permute.xlu0 %30 }
  0x7f   :  { %v110_v49 = vpop.permute.xlu1 %109 }
  0x84   :  { %v65_v13 = vpop.f32.mrf.mxu0 }
  0x85   :  { %v66_v17 = vadd.f32 %v65_v13, %v26_v14  ;;  %v169_v2 = vpop.permute.xlu0 %168 }
  0x87   :  { %v74_v19 = vsub.f32 0.0, %v66_v17 }
  0x89   :  { %v77_v22 = vmul.f32 1.442695, %v74_v19 }
  0x8a   :  { %v68_v16 = vpop.f32.mrf.mxu3 }
  0x8b   :  { %v69_v18 = vadd.f32 %v68_v16, %v31_v15  ;;  %229 = vpow2.f32 %v77_v22 }
  0x8d   :  { %v75_v20 = vsub.f32 0.0, %v69_v18 }
  0x8f   :  { %v79_v23 = vmul.f32 1.442695, %v75_v20 }
  0x91   :  { %231 = vpow2.f32 %v79_v23  ;;  %v230_v28 = vpop.eup %229 }
  0x92   :  { %v71_v21 = vpop.f32.mrf.mxu3  ;;  %v83_v32 = vadd.f32 1.0, %v230_v28 }
  0x93   :  { %v72_v24 = vadd.f32 %v71_v21, %v36_v12 }
  0x95   :  { %v76_v25 = vsub.f32 0.0, %v72_v24 }
  0x97   :  { %v81_v27 = vmul.f32 1.442695, %v76_v25  ;;  %v232_v30 = vpop.eup %231 }
  0x98   :  { %v84_v33 = vadd.f32 1.0, %v232_v30 }
  0x99   :  { %233 = vpow2.f32 %v81_v27 }
  0x9f   :  { %v234_v31 = vpop.eup %233 }
  0xa0   :  { %v85_v34 = vadd.f32 1.0, %v234_v31 }
  0xa2   :  { %235 = vrcp.f32 %v85_v34 }
  0xa3   :  { %237 = vrcp.f32 %v83_v32 }
  0xa4   :  { %239 = vrcp.f32 %v84_v33 }
  0xa8   :  { %v236_v35 = vpop.eup %235 }
  0xa9   :  { %v238_v36 = vpop.eup %237  ;;  %134 = vmatpush.msrb.mxu0 %v236_v35  ;;  %222 = vmatpush.msra.mxu1 %v236_v35 }
  0xaa   :  { %v240_v37 = vpop.eup %239 }
  0xab   :  { %135 = vmatpush.msrb.mxu0 %v240_v37  ;;  %223 = vmatpush.msra.mxu1 %v240_v37 }
  0xad   :  { %136 = vmatpush.msrb.mxu0 %v238_v36  ;;  %224 = vmatpush.msra.mxu1 %v238_v36 }
  0xae   :  { %214 = vmatmul.msk.f32.vlgmr.msra.gmra.mxu1 %vm38_vm0, %v208_v38  ;;  %213 = vmatmul.msk.f32.vlgmr.msrb.gmra.mxu0 %vm38_vm0, %v207_v39 }
  0xb6   :  { %215 = vmatmul.msk.f32.gmra.mxu1 %vm38_vm0, %v209_v40 }
 0x12b   :  { %v141_v43 = vpop.f32.mrf.mxu1  ;;  %v138_v44 = vpop.f32.mrf.mxu0 }
 0x12c   :  { %v142_v45 = vadd.f32 %v141_v43, %v105_v41  ;;  %v139_v46 = vadd.f32 %v138_v44, %v100_v42 }
 0x12e   :  { %v148_v47 = vsub.f32 0.0, %v142_v45  ;;  %v147_v48 = vsub.f32 0.0, %v139_v46 }
 0x130   :  { %v152_v51 = vmul.f32 1.442695, %v148_v47  ;;  %v150_v53 = vmul.f32 1.442695, %v147_v48 }
 0x132   :  { %241 = vpow2.f32 %v152_v51 }
 0x133   :  { %v144_v50 = vpop.f32.mrf.mxu1  ;;  %243 = vpow2.f32 %v150_v53 }
 0x134   :  { %v145_v52 = vadd.f32 %v144_v50, %v110_v49 }
 0x136   :  { %v149_v54 = vsub.f32 0.0, %v145_v52 }
 0x138   :  { %v154_v55 = vmul.f32 1.442695, %v149_v54  ;;  %v242_v56 = vpop.eup %241 }
 0x139   :  { %v244_v57 = vpop.eup %243  ;;  %v157_v59 = vadd.f32 1.0, %v242_v56 }
 0x13a   :  { %245 = vpow2.f32 %v154_v55  ;;  %v156_v61 = vadd.f32 1.0, %v244_v57 }
 0x140   :  { %v246_v58 = vpop.eup %245 }
 0x141   :  { %v158_v60 = vadd.f32 1.0, %v246_v58 }
 0x143   :  { %247 = vrcp.f32 %v158_v60 }
 0x144   :  { %249 = vrcp.f32 %v157_v59 }
 0x145   :  { %251 = vrcp.f32 %v156_v61 }
 0x149   :  { %v248_v62 = vpop.eup %247 }
 0x14a   :  { %187 = vmatpush.msra.mxu2 %v248_v62  ;;  %v250_v63 = vpop.eup %249 }
 0x14b   :  { %v252_v1 = vpop.eup %251 }
 0x14c   :  { %188 = vmatpush.msra.mxu2 %v250_v63 }
 0x14e   :  { %189 = vmatpush.msra.mxu2 %v252_v1 }
 0x14f   :  { %218 = vmatmul.msk.f32.vlgmr.msra.gmra.mxu2 %vm38_vm0, %v216_v0 }
 0x1d2   :  { %v191_v3 = vpop.f32.mrf.mxu2 }
 0x1d3   :  { %v192_v4 = vadd.f32 %v191_v3, %v169_v2 }
 0x1d5   :  { %v194_v5 = vsub.f32 0.0, %v192_v4 }
 0x1d7   :  { %v195_v6 = vmul.f32 1.442695, %v194_v5 }
 0x1d9   :  { %253 = vpow2.f32 %v195_v6 }
 0x1df   :  { %v254_v7 = vpop.eup %253 }
 0x1e0   :  { %v197_v8 = vadd.f32 1.0, %v254_v7 }
 0x1e2   :  { %255 = vrcp.f32 %v197_v8 }
 0x1e8   :  { %v256_v9 = vpop.eup %255 }
 0x1e9   :  { %199 = vst [vmem:[%s342_s3] sm:$0xff] %v256_v9 }

</bundles_post_ra>
